<compile_context>
chip_gen: v6e
topology: v6e:2x2x1
jax: 0.10.0
libtpu: 0.0.40
codegen_flags: <defaults>
</compile_context>

<pallas_src>
import functools
import math

import jax
import jax.numpy as jnp
from jax import lax
from jax.experimental import pallas as pl
from jax.experimental.pallas import tpu as pltpu


def _rte_add_kernel(x_ref, bias_ref, o_ref):
    """Streaming broadcast-add.

    x_ref    : VMEM (TBL, C, LAST) activation tile
    bias_ref : VMEM (TBL, 1, LAST) per-(b, i) additive bias (= Linear(emb[t]))
    o_ref    : VMEM (TBL, C, LAST) output tile
    """
    o_ref[...] = (x_ref[...].astype(jnp.float32) + bias_ref[...]).astype(o_ref.dtype)


def make_sinusoid_table(max_len, n_hid):
    """Deterministic sinusoid embedding table, identical to the PyTorch init."""
    position = jnp.arange(max_len, dtype=jnp.float32)[:, None]           # (L, 1)
    div_term = jnp.exp(jnp.arange(0, n_hid, 2, dtype=jnp.float32)
                       * -(math.log(10000.0) / n_hid))                   # (D/2,)
    scale = 1.0 / math.sqrt(n_hid)
    emb = jnp.zeros((max_len, n_hid), jnp.float32)
    emb = emb.at[:, 0::2].set(jnp.sin(position * div_term) * scale)
    emb = emb.at[:, 1::2].set(jnp.cos(position * div_term) * scale)
    return emb


def rte_forward(x, dts, emb_table, lin_weight, lin_bias, *, rte_ratio,
                target_tile_bytes=2 << 20, donate_x=False):
    """JAX/Pallas equivalent of RTE.forward.

    x:          (B, L, H, W, D) float
    dts:        (B, L) int
    emb_table:  (max_len, D) float  (frozen sinusoid table)
    lin_weight: (D, D) float        (PyTorch nn.Linear convention: (out, in))
    lin_bias:   (D,) float
    returns:    (B, L, H, W, D)
    """
    B, L, H, W, D = x.shape
    max_len = emb_table.shape[0]
    BL = B * L
    HW = H * W
    itemsize = jnp.dtype(x.dtype).itemsize

    # ---- All "compute" hoisted out of the kernel ----------------------------
    # One-off (max_len, D) @ (D, D) matmul; negligible next to streaming x.
    bias_tab = (jnp.dot(emb_table.astype(jnp.float32),
                        lin_weight.astype(jnp.float32).T,
                        precision=lax.Precision.HIGHEST)
                + lin_bias.astype(jnp.float32))                    # (max_len, D)
    # NOTE: clip is a deliberate safety choice (TPU has no runtime bounds
    # check); PyTorch would raise on out-of-range indices instead.
    t_idx = jnp.clip(dts.reshape(BL).astype(jnp.int32) * rte_ratio,
                     0, max_len - 1)
    bias_bl = bias_tab[t_idx]                                      # (BL, D) f32

    # ---- Lane-dense layout ---------------------------------------------------
    LANE = 128
    lane_dense = (D < LANE) and (LANE % D == 0) and ((HW * D) % LANE == 0)
    if lane_dense:
        last = LANE
        C = (HW * D) // LANE
        x_flat = x.reshape(BL, C, last)            # contiguous -> free reshape
        bias_flat = jnp.tile(bias_bl, (1, LANE // D)).reshape(BL, 1, last)
    else:
        # Full-extent (HW, D) blocks; stores are masked only if D % 128 != 0.
        last = D
        C = HW
        x_flat = x.reshape(BL, C, last)
        bias_flat = bias_bl.reshape(BL, 1, last)

    # ---- Many (b, i) rows per grid step --------------------------------------
    row_bytes = C * last * itemsize
    tbl = int(max(1, min(BL, target_tile_bytes // max(1, row_bytes))))
    grid = (pl.cdiv(BL, tbl),)

    extra = {}
    if donate_x:
        extra["input_output_aliases"] = {0: 0}     # result overwrites x

    out_flat = pl.pallas_call(
        _rte_add_kernel,
        out_shape=jax.ShapeDtypeStruct((BL, C, last), x.dtype),
        grid=grid,
        in_specs=[
            pl.BlockSpec((tbl, C, last), lambda g: (g, 0, 0)),    # x tile
            pl.BlockSpec((tbl, 1, last), lambda g: (g, 0, 0)),    # bias rows
        ],
        out_specs=pl.BlockSpec((tbl, C, last), lambda g: (g, 0, 0)),
        cost_estimate=pl.CostEstimate(
            flops=BL * HW * D,
            transcendentals=0,
            bytes_accessed=2 * BL * HW * D * itemsize + BL * last * 4),
        compiler_params=pltpu.CompilerParams(
            dimension_semantics=("parallel",)),
        **extra,
    )(x_flat, bias_flat)

    return out_flat.reshape(B, L, H, W, D)


if __name__ == "__main__":
    key = jax.random.PRNGKey(0)

    # Small shapes consistent with RTE.forward: x (B, L, H, W, dim), dts (B, L).
    dim = 32
    rte_ratio = 2
    max_len = 100
    B, L, H, W = 2, 3, 8, 16

    k_x, k_w, k_b, k_t = jax.random.split(key, 4)
    x = jax.random.normal(k_x, (B, L, H, W, dim), dtype=jnp.float32)
    dts = jax.random.randint(k_t, (B, L), 0, max_len // rte_ratio,
                             dtype=jnp.int32)

    emb_table = make_sinusoid_table(max_len, dim)
    lin_weight = jax.random.normal(k_w, (dim, dim),
                                   dtype=jnp.float32) / math.sqrt(dim)
    lin_bias = jax.random.normal(k_b, (dim,), dtype=jnp.float32) * 0.01

    fwd = jax.jit(functools.partial(rte_forward, rte_ratio=rte_ratio))
    out = jax.block_until_ready(fwd(x, dts, emb_table, lin_weight, lin_bias))

    # Pure-JAX reference of RTE.forward (Linear applied to the selected emb
    # row, broadcast over the (H, W) dims of each x[b, i]).
    t_idx = jnp.clip(dts * rte_ratio, 0, max_len - 1)
    bias_tab = jnp.dot(emb_table, lin_weight.T,
                       precision=lax.Precision.HIGHEST) + lin_bias
    ref = x + bias_tab[t_idx][:, :, None, None, :]

    assert out.shape == x.shape
    assert out.dtype == x.dtype
    max_err = float(jnp.max(jnp.abs(out - ref)))
    assert jnp.allclose(out, ref, atol=1e-5, rtol=1e-5), max_err

    print("KERNEL_OK")
</pallas_src>

<mosaic_0001>
module attributes {stable_mosaic.version = 11 : i64} {
  func.func @_rte_add_kernel(%arg0: i32, %arg1: memref<6x32x128xf32, #tpu.memory_space<vmem>>, %arg2: memref<6x1x128xf32, #tpu.memory_space<vmem>>, %arg3: memref<6x32x128xf32, #tpu.memory_space<vmem>>) attributes {dimension_semantics = [#tpu.dimension_semantics<parallel>], iteration_bounds = array<i64: 1>, scalar_prefetch = 0 : i64, scratch_operands = 0 : i64, tpu.core_type = #tpu.core_type<tc>, window_params = [{transform_indices = @transform_0, window_bounds = array<i64: 6, 32, 128>}, {transform_indices = @transform_1, window_bounds = array<i64: 6, 1, 128>}, {transform_indices = @transform_2, window_bounds = array<i64: 6, 32, 128>}]} {
    %c0 = arith.constant 0 : index
    %c0_0 = arith.constant 0 : index
    %c0_1 = arith.constant 0 : index
    %0 = vector.load %arg1[%c0, %c0_0, %c0_1] : memref<6x32x128xf32, #tpu.memory_space<vmem>>, vector<6x32x128xf32>
    %c0_2 = arith.constant 0 : index
    %c0_3 = arith.constant 0 : index
    %c0_4 = arith.constant 0 : index
    %1 = vector.load %arg2[%c0_2, %c0_3, %c0_4] : memref<6x1x128xf32, #tpu.memory_space<vmem>>, vector<6x1x128xf32>
    %2 = vector.broadcast %1 : vector<6x1x128xf32> to vector<6x32x128xf32>
    %3 = arith.addf %0, %2 : vector<6x32x128xf32>
    %c0_5 = arith.constant 0 : index
    %c0_6 = arith.constant 0 : index
    %c0_7 = arith.constant 0 : index
    %4 = vector.load %arg3[%c0_5, %c0_6, %c0_7] : memref<6x32x128xf32, #tpu.memory_space<vmem>>, vector<6x32x128xf32>
    tpu.vector_store %arg3[%c0_5, %c0_6, %c0_7], %3 {strides = array<i32>} : memref<6x32x128xf32, #tpu.memory_space<vmem>>, vector<6x32x128xf32>,
    return
  }
  func.func @transform_0(%arg0: i32) -> (i32, i32, i32) {
    %c0_i32 = arith.constant 0 : i32
    %c0_i32_0 = arith.constant 0 : i32
    %c0_i32_1 = arith.constant 0 : i32
    return %arg0, %c0_i32, %c0_i32_0 : i32, i32, i32
  }
  func.func @transform_1(%arg0: i32) -> (i32, i32, i32) {
    %c0_i32 = arith.constant 0 : i32
    %c0_i32_0 = arith.constant 0 : i32
    %c0_i32_1 = arith.constant 0 : i32
    return %arg0, %c0_i32, %c0_i32_0 : i32, i32, i32
  }
  func.func @transform_2(%arg0: i32) -> (i32, i32, i32) {
    %c0_i32 = arith.constant 0 : i32
    %c0_i32_0 = arith.constant 0 : i32
    %c0_i32_1 = arith.constant 0 : i32
    return %arg0, %c0_i32, %c0_i32_0 : i32, i32, i32
  }
}

</mosaic_0001>

<bundles_post_ra>
// kernel: rte_forward.1
= control target key start
LH: loop header
LB: loop body
LE: loop exit
PB: predicated region body
PF: predicated region fallthrough
CT: control target
= control target key end

     0   :  { %s312_s0 = inlined_call_operand.vmem [shape: f32[6,32,128], index: 0, kind: input, shape index: {}]   ;;  %s313_s1 = inlined_call_operand.vmem [shape: f32[6,1,128], index: 1, kind: input, shape index: {}]   ;;  %s314_s2 = inlined_call_operand.vmem [shape: f32[6,32,128], index: 2, kind: output, shape index: {}]  }
   0x1   :  { %v11_v0 = vld [vmem:[%s312_s0] sm:$0xff]  ;;  %v12_v2 = vld [vmem:[%s312_s0 + $0x8] sm:$0xff]  ;;  %v13_v5 = vld [vmem:[%s312_s0 + $0x10] sm:$0xff] }
   0x2   :  { %v129_v1 = vld [vmem:[%s313_s1] ss:$0 sm:$0xff]  ;;  %v14_v6 = vld [vmem:[%s312_s0 + $0x18] sm:$0xff]  ;;  %v130_v10 = vld [vmem:[%s313_s1 + $0x1] ss:$0 sm:$0xff] }
   0x3   :  { %v77_v3 = vadd.f32 %v129_v1, %v11_v0  ;;  %v78_v4 = vadd.f32 %v129_v1, %v12_v2  ;;  %v15_v7 = vld [vmem:[%s312_s0 + $0x20] sm:$0xff]  ;;  %v79_v8 = vadd.f32 %v129_v1, %v13_v5  ;;  %v80_v9 = vadd.f32 %v129_v1, %v14_v6  ;;  %v16_v11 = vld [vmem:[%s312_s0 + $0x28] sm:$0xff]  ;;  %v17_v12 = vld [vmem:[%s312_s0 + $0x30] sm:$0xff] }
   0x4   :  { %v81_v13 = vadd.f32 %v130_v10, %v15_v7  ;;  %v82_v14 = vadd.f32 %v130_v10, %v16_v11  ;;  %v83_v15 = vadd.f32 %v130_v10, %v17_v12  ;;  %v18_v16 = vld [vmem:[%s312_s0 + $0x38] sm:$0xff]  ;;  %v19_v17 = vld [vmem:[%s312_s0 + $0x40] sm:$0xff]  ;;  %v20_v21 = vld [vmem:[%s312_s0 + $0x48] sm:$0xff] }
   0x5   :  { %101 = vst [vmem:[%s314_s2] sm:$0xff] %v77_v3  ;;  %102 = vst [vmem:[%s314_s2 + $0x8] sm:$0xff] %v78_v4  ;;  %v131_v18 = vld [vmem:[%s313_s1 + $0x2] ss:$0 sm:$0xff]  ;;  %v84_v19 = vadd.f32 %v130_v10, %v18_v16  ;;  %v21_v22 = vld [vmem:[%s312_s0 + $0x50] sm:$0xff] }
   0x6   :  { %103 = vst [vmem:[%s314_s2 + $0x10] sm:$0xff] %v79_v8  ;;  %104 = vst [vmem:[%s314_s2 + $0x18] sm:$0xff] %v80_v9  ;;  %v85_v20 = vadd.f32 %v131_v18, %v19_v17  ;;  %v22_v23 = vld [vmem:[%s312_s0 + $0x58] sm:$0xff]  ;;  %v86_v24 = vadd.f32 %v131_v18, %v20_v21  ;;  %v87_v25 = vadd.f32 %v131_v18, %v21_v22  ;;  %v23_v27 = vld [vmem:[%s312_s0 + $0x60] sm:$0xff] }
   0x7   :  { %105 = vst [vmem:[%s314_s2 + $0x20] sm:$0xff] %v81_v13  ;;  %106 = vst [vmem:[%s314_s2 + $0x28] sm:$0xff] %v82_v14  ;;  %v88_v26 = vadd.f32 %v131_v18, %v22_v23  ;;  %v132_v28 = vld [vmem:[%s313_s1 + $0x3] ss:$0 sm:$0xff]  ;;  %v24_v29 = vld [vmem:[%s312_s0 + $0x68] sm:$0xff] }
   0x8   :  { %107 = vst [vmem:[%s314_s2 + $0x30] sm:$0xff] %v83_v15  ;;  %108 = vst [vmem:[%s314_s2 + $0x38] sm:$0xff] %v84_v19  ;;  %v89_v30 = vadd.f32 %v132_v28, %v23_v27  ;;  %v90_v31 = vadd.f32 %v132_v28, %v24_v29  ;;  %v25_v32 = vld [vmem:[%s312_s0 + $0x70] sm:$0xff]  ;;  %v26_v33 = vld [vmem:[%s312_s0 + $0x78] sm:$0xff] }
   0x9   :  { %109 = vst [vmem:[%s314_s2 + $0x40] sm:$0xff] %v85_v20  ;;  %v27_v34 = vld [vmem:[%s312_s0 + $0x80] sm:$0xff]  ;;  %110 = vst [vmem:[%s314_s2 + $0x48] sm:$0xff] %v86_v24  ;;  %v91_v35 = vadd.f32 %v132_v28, %v25_v32  ;;  %v92_v36 = vadd.f32 %v132_v28, %v26_v33  ;;  %v28_v38 = vld [vmem:[%s312_s0 + $0x88] sm:$0xff] }
   0xa   :  { %111 = vst [vmem:[%s314_s2 + $0x50] sm:$0xff] %v87_v25  ;;  %112 = vst [vmem:[%s314_s2 + $0x58] sm:$0xff] %v88_v26  ;;  %v133_v37 = vld [vmem:[%s313_s1 + $0x4] ss:$0 sm:$0xff]  ;;  %v29_v39 = vld [vmem:[%s312_s0 + $0x90] sm:$0xff] }
   0xb   :  { %113 = vst [vmem:[%s314_s2 + $0x60] sm:$0xff] %v89_v30  ;;  %114 = vst [vmem:[%s314_s2 + $0x68] sm:$0xff] %v90_v31  ;;  %v93_v40 = vadd.f32 %v133_v37, %v27_v34  ;;  %v94_v41 = vadd.f32 %v133_v37, %v28_v38  ;;  %v95_v42 = vadd.f32 %v133_v37, %v29_v39  ;;  %v30_v43 = vld [vmem:[%s312_s0 + $0x98] sm:$0xff]  ;;  %v31_v44 = vld [vmem:[%s312_s0 + $0xa0] sm:$0xff] }
   0xc   :  { %v134_v45 = vld [vmem:[%s313_s1 + $0x5] ss:$0 sm:$0xff]  ;;  %115 = vst [vmem:[%s314_s2 + $0x70] sm:$0xff] %v91_v35  ;;  %116 = vst [vmem:[%s314_s2 + $0x78] sm:$0xff] %v92_v36  ;;  %v96_v46 = vadd.f32 %v133_v37, %v30_v43  ;;  %v32_v48 = vld [vmem:[%s312_s0 + $0xa8] sm:$0xff] }
   0xd   :  { %v97_v47 = vadd.f32 %v134_v45, %v31_v44  ;;  %v33_v49 = vld [vmem:[%s312_s0 + $0xb0] sm:$0xff]  ;;  %v34_v50 = vld [vmem:[%s312_s0 + $0xb8] sm:$0xff]  ;;  %117 = vst [vmem:[%s314_s2 + $0x80] sm:$0xff] %v93_v40  ;;  %118 = vst [vmem:[%s314_s2 + $0x88] sm:$0xff] %v94_v41  ;;  %v98_v51 = vadd.f32 %v134_v45, %v32_v48 }
   0xe   :  { %119 = vst [vmem:[%s314_s2 + $0x90] sm:$0xff] %v95_v42  ;;  %v99_v52 = vadd.f32 %v134_v45, %v33_v49  ;;  %v100_v53 = vadd.f32 %v134_v45, %v34_v50  ;;  %120 = vst [vmem:[%s314_s2 + $0x98] sm:$0xff] %v96_v46 }
   0xf   :  { %121 = vst [vmem:[%s314_s2 + $0xa0] sm:$0xff] %v97_v47  ;;  %122 = vst [vmem:[%s314_s2 + $0xa8] sm:$0xff] %v98_v51 }
  0x10   :  { %123 = vst [vmem:[%s314_s2 + $0xb0] sm:$0xff] %v99_v52  ;;  %124 = vst [vmem:[%s314_s2 + $0xb8] sm:$0xff] %v100_v53 }

</bundles_post_ra>
